<compile_context>
chip_gen: v7x
topology: tpu7x:2x2x1
jax: 0.10.0
libtpu: 0.0.40
codegen_flags: <defaults>
</compile_context>

<pallas_src>
import jax
import jax.numpy as jnp
from jax.experimental import pallas as pl
from jax.experimental.pallas import tpu as pltpu

_SUB = 16     # sublane granularity: safe for bf16 (16,128) and f32 (8,128) tiles
_LANE = 128


def _round_up(x: int, m: int) -> int:
    return ((x + m - 1) // m) * m


def _tile_config():
    """Generation-aware (tile_b_cap, vmem_limit_bytes)."""
    kind = ""
    try:
        kind = jax.devices()[0].device_kind.lower()
    except Exception:
        pass
    vmem_cap = None
    try:
        vmem_cap = getattr(pltpu.get_tpu_info(), "vmem_capacity_bytes", None)
    except Exception:
        pass
    if vmem_cap is not None:
        big_vmem = (vmem_cap >= 96 * 2**20) and ("7" not in kind)
    else:
        big_vmem = any(t in kind for t in ("v5", "v6")) and ("7" not in kind)
    if big_vmem:
        # v5e / v6e: 128 MiB physical VMEM -> big tiles, raised scoped limit.
        return 8192, 96 * 2**20
    # v7x (64 MiB physical, 2 TensorCores) or unknown: stay conservative.
    return 2048, 40 * 2**20


def make_mixer_kernel(n_agents: int, hidden_dim: int, state_dim: int):
    """Builds the Pallas kernel body with static n_agents / hidden_dim / state_dim."""
    nh = n_agents * hidden_dim

    def kernel(x_ref, wcat_ref, bcat_ref, w2b_ref, b2b_ref, out_ref):
        x = x_ref[...]                                       # (TB, S+N) bf16
        qs = x[:, state_dim:state_dim + n_agents].astype(jnp.float32)   # (TB, N)

        # One bf16 MXU matmul (f32 accumulation) for all four state-driven
        # hypernet linears.  The agent_qs lanes of x hit zero weight rows, so
        # the merged row tile can be fed to the MXU without a K slice.
        h_all = jnp.dot(x, wcat_ref[...],
                        preferred_element_type=jnp.float32) + bcat_ref[...]   # (TB, 256) f32

        hw1 = h_all[:, :nh]                                   # (TB, N*H)
        hb1 = h_all[:, nh:nh + hidden_dim]                    # (TB, H)
        hw2 = h_all[:, nh + hidden_dim:nh + 2 * hidden_dim]   # (TB, H)
        hb2_h = jnp.maximum(
            h_all[:, nh + 2 * hidden_dim:nh + 3 * hidden_dim], 0.0)  # (TB, H)

        # Mixing layer 1: hidden[b,h] = sum_a qs[b,a] * w1[b,a,h] + b1[b,h].
        # n_agents is small & static -> unrolled broadcast-FMA (no reshape).
        hidden = hb1
        for a in range(n_agents):
            hidden = hidden + qs[:, a:a + 1] * hw1[:, a * hidden_dim:(a + 1) * hidden_dim]
        hidden = jnp.maximum(hidden, 0.0)                     # relu, (TB, H)

        # Final layer with the (H, 1) hyper_b2 matmul folded into the same
        # cross-lane reduction: y = sum_h(hidden*w2 + relu(hb2)*w2b) + b2b.
        z = hidden * hw2 + hb2_h * w2b_ref[...]               # (TB, H)
        out_ref[...] = jnp.sum(z, axis=1, keepdims=True) + b2b_ref[0, 0]

    return kernel


def mixer_forward(agent_qs, state, fused, n_agents, hidden_dim,
                  tile_b_cap=None, vmem_limit_bytes=None):
    bs = agent_qs.shape[0]
    state = state.reshape(bs, -1).astype(jnp.float32)
    state_dim = state.shape[1]
    w_pad = fused["w_cat"].shape[1]
    in_cols = state_dim + n_agents
    assert w_pad >= n_agents * hidden_dim + 3 * hidden_dim
    assert fused["w_cat"].shape[0] == in_cols

    auto_tile, auto_vmem = _tile_config()
    if tile_b_cap is None:
        tile_b_cap = auto_tile
    if vmem_limit_bytes is None:
        vmem_limit_bytes = auto_vmem
    # Enforce sublane alignment on the cap regardless of what the caller passed.
    tile_b_cap = max(_SUB, (int(tile_b_cap) // _SUB) * _SUB)

    # Single streamed row tile: [state | agent_qs] in bf16 (one 128-lane tile).
    x = jnp.concatenate([state, agent_qs.astype(jnp.float32)], axis=1)
    x = x.astype(jnp.bfloat16)

    # Batch tiling: minimal padding; force >= 2 grid steps when the batch
    # allows it so the "parallel" axis shards across both v7x TensorCores.
    bs_rounded = _round_up(bs, _SUB)
    n_steps = pl.cdiv(bs_rounded, tile_b_cap)
    if n_steps == 1 and bs_rounded >= 2 * _SUB:
        n_steps = 2
    tile_b = _round_up(pl.cdiv(bs_rounded, n_steps), _SUB)
    bs_pad = tile_b * n_steps
    if bs_pad != bs:
        x = jnp.pad(x, ((0, bs_pad - bs), (0, 0)))

    kernel = make_mixer_kernel(n_agents, hidden_dim, state_dim)

    flops = 2 * bs_pad * in_cols * w_pad + 8 * bs_pad * hidden_dim * (n_agents + 2)
    bytes_accessed = (2 * bs_pad * in_cols + 4 * bs_pad            # x in (bf16), y out (f32)
                      + 2 * in_cols * w_pad + 4 * w_pad            # resident fused weights
                      + 4 * (hidden_dim + 1))                      # w2b row + scalar bias

    y = pl.pallas_call(
        kernel,
        out_shape=jax.ShapeDtypeStruct((bs_pad, 1), jnp.float32),
        grid_spec=pltpu.PrefetchScalarGridSpec(
            num_scalar_prefetch=0,
            grid=(n_steps,),
            in_specs=[
                pl.BlockSpec((tile_b, in_cols), lambda i: (i, 0)),   # [state|qs] row tile (bf16)
                pl.BlockSpec((in_cols, w_pad), lambda i: (0, 0)),    # fused W (resident, bf16)
                pl.BlockSpec((1, w_pad), lambda i: (0, 0)),          # fused bias (resident, f32)
                pl.BlockSpec((1, hidden_dim), lambda i: (0, 0)),     # hyper_b2[2] weight row (f32)
                pl.BlockSpec((1, 1), lambda i: (0, 0),
                             memory_space=pltpu.MemorySpace.SMEM),   # hyper_b2[2] bias scalar
            ],
            out_specs=pl.BlockSpec((tile_b, 1), lambda i: (i, 0)),
        ),
        compiler_params=pltpu.CompilerParams(
            dimension_semantics=("parallel",),
            vmem_limit_bytes=int(vmem_limit_bytes),
        ),
        cost_estimate=pl.CostEstimate(
            flops=int(flops), transcendentals=0,
            bytes_accessed=int(bytes_accessed)),
    )(x, fused["w_cat"], fused["b_cat"], fused["w2b_row"], fused["b2b"])

    return y[:bs]  # (bs, 1) == y.view(-1, 1) in the PyTorch module


def init_params(key, n_agents, state_dim, hidden_dim):
    """Deterministic synthetic parameters; weights stored as (in, out)."""
    ks = jax.random.split(key, 10)
    scale = 0.1

    def w(k, shp):
        return (scale * jax.random.normal(k, shp)).astype(jnp.float32)

    return {
        "w_hw1":  w(ks[0], (state_dim, n_agents * hidden_dim)),
        "b_hw1":  w(ks[1], (1, n_agents * hidden_dim)),
        "w_hb1":  w(ks[2], (state_dim, hidden_dim)),
        "b_hb1":  w(ks[3], (1, hidden_dim)),
        "w_hw2":  w(ks[4], (state_dim, hidden_dim)),
        "b_hw2":  w(ks[5], (1, hidden_dim)),
        "w_hb2a": w(ks[6], (state_dim, hidden_dim)),
        "b_hb2a": w(ks[7], (1, hidden_dim)),
        "w_hb2b": w(ks[8], (hidden_dim, 1)),
        "b_hb2b": w(ks[9], (1, 1)),
    }


def fuse_params(params, n_agents):
    """One-time param re-layout (at init, not per call).

    * Concatenate the four state-driven hypernet linears along the output axis
      and zero-pad the width to a lane-dense multiple of 128 (224 -> 256).
    * Append n_agents zero rows so the kernel can feed the merged
      [state | agent_qs] row tile straight to the MXU.
    * Store the matmul weight in bf16 (MXU-native); biases stay f32.
    * Store the trailing (H, 1) hyper_b2 weight as a (1, H) f32 row for the
      folded final reduction; its (1, 1) bias goes to SMEM.
    """
    w_cat = jnp.concatenate(
        [params["w_hw1"], params["w_hb1"], params["w_hw2"], params["w_hb2a"]],
        axis=1)
    b_cat = jnp.concatenate(
        [params["b_hw1"], params["b_hb1"], params["b_hw2"], params["b_hb2a"]],
        axis=1)
    w_tot = w_cat.shape[1]
    w_pad = _round_up(w_tot, _LANE)
    w_cat = jnp.pad(w_cat, ((0, n_agents), (0, w_pad - w_tot))).astype(jnp.bfloat16)
    b_cat = jnp.pad(b_cat, ((0, 0), (0, w_pad - w_tot))).astype(jnp.float32)
    return {
        "w_cat": w_cat,                                      # (S+N, 256) bf16
        "b_cat": b_cat,                                      # (1, 256)   f32
        "w2b_row": params["w_hb2b"].T.astype(jnp.float32),   # (1, H)     f32
        "b2b": params["b_hb2b"].astype(jnp.float32),         # (1, 1)     f32 (SMEM)
    }


def mixer_reference(agent_qs, state, params, n_agents, hidden_dim):
    """Pure-JAX reference mirroring the PyTorch forward, for validation."""
    bs = agent_qs.shape[0]
    state = state.reshape(bs, -1)
    w1 = (state @ params["w_hw1"] + params["b_hw1"]).reshape(bs, n_agents, hidden_dim)
    b1 = (state @ params["w_hb1"] + params["b_hb1"]).reshape(bs, 1, hidden_dim)
    hidden = jnp.einsum("ba,bah->bh", agent_qs, w1)[:, None, :] + b1
    hidden = jax.nn.relu(hidden)
    w2 = (state @ params["w_hw2"] + params["b_hw2"]).reshape(bs, hidden_dim, 1)
    h2 = jax.nn.relu(state @ params["w_hb2a"] + params["b_hb2a"])
    b2 = (h2 @ params["w_hb2b"] + params["b_hb2b"]).reshape(bs, 1, 1)
    y = jnp.einsum("bqh,bho->bqo", hidden, w2) + b2
    return y.reshape(-1, 1)


if __name__ == "__main__":
    n_agents, state_dim, hidden_dim = 4, 16, 32
    bs = 8

    key = jax.random.PRNGKey(0)
    k_qs, k_st, k_p = jax.random.split(key, 3)

    agent_qs = jax.random.normal(k_qs, (bs, n_agents), dtype=jnp.float32)
    state = jax.random.normal(k_st, (bs, state_dim), dtype=jnp.float32)
    params = init_params(k_p, n_agents, state_dim, hidden_dim)
    fused = fuse_params(params, n_agents)

    y = mixer_forward(agent_qs, state, fused, n_agents, hidden_dim)
    y = jax.block_until_ready(y)
    assert y.shape == (bs, 1)

    # Tight check: reference fed the same bf16-quantized inputs / matmul
    # weights the kernel sees (isolates kernel algebra from bf16 rounding).
    q_bf = lambda a: a.astype(jnp.bfloat16).astype(jnp.float32)
    q_params = dict(params)
    for k in ("w_hw1", "w_hb1", "w_hw2", "w_hb2a"):
        q_params[k] = q_bf(params[k])
    y_q = mixer_reference(q_bf(agent_qs), q_bf(state), q_params, n_agents, hidden_dim)
    assert jnp.allclose(y, y_q, atol=1e-4, rtol=1e-4), "mismatch vs bf16-quantized reference"

    # Loose check against the pure-f32 PyTorch-equivalent reference (error is
    # bounded by bf16 rounding of inputs/weights).
    y_ref = mixer_reference(agent_qs, state, params, n_agents, hidden_dim)
    assert jnp.allclose(y, y_ref, atol=1e-1, rtol=5e-2), "mismatch vs f32 reference"

    print("KERNEL_OK")
</pallas_src>

<mosaic_0001>
module attributes {stable_mosaic.version = 11 : i64} {
  func.func @kernel(%arg0: i32, %arg1: memref<16x20xbf16, #tpu.memory_space<vmem>>, %arg2: memref<20x256xbf16, #tpu.memory_space<vmem>>, %arg3: memref<1x256xf32, #tpu.memory_space<vmem>>, %arg4: memref<1x32xf32, #tpu.memory_space<vmem>>, %arg5: memref<1x1xf32, #tpu.memory_space<smem>>, %arg6: memref<16x1xf32, #tpu.memory_space<vmem>>) attributes {dimension_semantics = [#tpu.dimension_semantics<parallel>], iteration_bounds = array<i64: 1>, scalar_prefetch = 0 : i64, scratch_operands = 0 : i64, tpu.core_type = #tpu.core_type<tc>, window_params = [{transform_indices = @transform_0, window_bounds = array<i64: 16, 20>}, {pipeline_mode = #tpu.pipeline_mode<synchronous>, transform_indices = @transform_1, window_bounds = array<i64: 20, 256>}, {pipeline_mode = #tpu.pipeline_mode<synchronous>, transform_indices = @transform_2, window_bounds = array<i64: 1, 256>}, {pipeline_mode = #tpu.pipeline_mode<synchronous>, transform_indices = @transform_3, window_bounds = array<i64: 1, 32>}, {transform_indices = @transform_4, window_bounds = array<i64: 1, 1>}, {transform_indices = @transform_5, window_bounds = array<i64: 16, 1>}]} {
    %c0 = arith.constant 0 : index
    %c0_0 = arith.constant 0 : index
    %0 = vector.load %arg1[%c0, %c0_0] : memref<16x20xbf16, #tpu.memory_space<vmem>>, vector<16x20xbf16>
    %1 = vector.extract_strided_slice %0 {offsets = [0, 16], sizes = [16, 4], strides = [1, 1]} : vector<16x20xbf16> to vector<16x4xbf16>
    %2 = arith.extf %1 : vector<16x4xbf16> to vector<16x4xf32>
    %c0_1 = arith.constant 0 : index
    %c0_2 = arith.constant 0 : index
    %3 = vector.load %arg2[%c0_1, %c0_2] : memref<20x256xbf16, #tpu.memory_space<vmem>>, vector<20x256xbf16>
    %cst = arith.constant dense<0.000000e+00> : vector<16x256xf32>
    %4 = tpu.matmul %0, %3, %cst {dimension_numbers = #tpu.dot_dimension_numbers<[1], [0], [0], [1], [0, 0, 1, 1], [], []>} : vector<16x20xbf16>, vector<20x256xbf16>, vector<16x256xf32> -> vector<16x256xf32>
    %c0_3 = arith.constant 0 : index
    %c0_4 = arith.constant 0 : index
    %5 = vector.load %arg3[%c0_3, %c0_4] : memref<1x256xf32, #tpu.memory_space<vmem>>, vector<1x256xf32>
    %6 = vector.broadcast %5 : vector<1x256xf32> to vector<16x256xf32>
    %7 = arith.addf %4, %6 : vector<16x256xf32>
    %8 = vector.extract_strided_slice %7 {offsets = [0, 0], sizes = [16, 128], strides = [1, 1]} : vector<16x256xf32> to vector<16x128xf32>
    %9 = vector.extract_strided_slice %7 {offsets = [0, 128], sizes = [16, 32], strides = [1, 1]} : vector<16x256xf32> to vector<16x32xf32>
    %10 = vector.extract_strided_slice %7 {offsets = [0, 160], sizes = [16, 32], strides = [1, 1]} : vector<16x256xf32> to vector<16x32xf32>
    %11 = vector.extract_strided_slice %7 {offsets = [0, 192], sizes = [16, 32], strides = [1, 1]} : vector<16x256xf32> to vector<16x32xf32>
    %cst_5 = arith.constant 0.000000e+00 : f32
    %12 = vector.broadcast %cst_5 : f32 to vector<16x32xf32>
    %13 = arith.maximumf %11, %12 : vector<16x32xf32>
    %14 = vector.extract_strided_slice %2 {offsets = [0, 0], sizes = [16, 1], strides = [1, 1]} : vector<16x4xf32> to vector<16x1xf32>
    %15 = vector.extract_strided_slice %8 {offsets = [0, 0], sizes = [16, 32], strides = [1, 1]} : vector<16x128xf32> to vector<16x32xf32>
    %16 = vector.broadcast %14 : vector<16x1xf32> to vector<16x32xf32>
    %17 = arith.mulf %16, %15 : vector<16x32xf32>
    %18 = arith.addf %9, %17 : vector<16x32xf32>
    %19 = vector.extract_strided_slice %2 {offsets = [0, 1], sizes = [16, 1], strides = [1, 1]} : vector<16x4xf32> to vector<16x1xf32>
    %20 = vector.extract_strided_slice %8 {offsets = [0, 32], sizes = [16, 32], strides = [1, 1]} : vector<16x128xf32> to vector<16x32xf32>
    %21 = vector.broadcast %19 : vector<16x1xf32> to vector<16x32xf32>
    %22 = arith.mulf %21, %20 : vector<16x32xf32>
    %23 = arith.addf %18, %22 : vector<16x32xf32>
    %24 = vector.extract_strided_slice %2 {offsets = [0, 2], sizes = [16, 1], strides = [1, 1]} : vector<16x4xf32> to vector<16x1xf32>
    %25 = vector.extract_strided_slice %8 {offsets = [0, 64], sizes = [16, 32], strides = [1, 1]} : vector<16x128xf32> to vector<16x32xf32>
    %26 = vector.broadcast %24 : vector<16x1xf32> to vector<16x32xf32>
    %27 = arith.mulf %26, %25 : vector<16x32xf32>
    %28 = arith.addf %23, %27 : vector<16x32xf32>
    %29 = vector.extract_strided_slice %2 {offsets = [0, 3], sizes = [16, 1], strides = [1, 1]} : vector<16x4xf32> to vector<16x1xf32>
    %30 = vector.extract_strided_slice %8 {offsets = [0, 96], sizes = [16, 32], strides = [1, 1]} : vector<16x128xf32> to vector<16x32xf32>
    %31 = vector.broadcast %29 : vector<16x1xf32> to vector<16x32xf32>
    %32 = arith.mulf %31, %30 : vector<16x32xf32>
    %33 = arith.addf %28, %32 : vector<16x32xf32>
    %cst_6 = arith.constant 0.000000e+00 : f32
    %34 = vector.broadcast %cst_6 : f32 to vector<16x32xf32>
    %35 = arith.maximumf %33, %34 : vector<16x32xf32>
    %36 = arith.mulf %35, %10 : vector<16x32xf32>
    %c0_7 = arith.constant 0 : index
    %c0_8 = arith.constant 0 : index
    %37 = vector.load %arg4[%c0_7, %c0_8] : memref<1x32xf32, #tpu.memory_space<vmem>>, vector<1x32xf32>
    %38 = vector.broadcast %37 : vector<1x32xf32> to vector<16x32xf32>
    %39 = arith.mulf %13, %38 : vector<16x32xf32>
    %40 = arith.addf %36, %39 : vector<16x32xf32>
    %cst_9 = arith.constant dense<0.000000e+00> : vector<16xf32>
    %41 = vector.multi_reduction <add>, %40, %cst_9 [1] : vector<16x32xf32> to vector<16xf32>
    %42 = vector.shape_cast %41 : vector<16xf32> to vector<16x1xf32>
    %c0_10 = arith.constant 0 : index
    %c0_11 = arith.constant 0 : index
    %43 = memref.load %arg5[%c0_10, %c0_11] : memref<1x1xf32, #tpu.memory_space<smem>>
    %44 = vector.broadcast %43 : f32 to vector<16x1xf32>
    %45 = arith.addf %42, %44 : vector<16x1xf32>
    %c0_12 = arith.constant 0 : index
    %c0_13 = arith.constant 0 : index
    %46 = vector.load %arg6[%c0_12, %c0_13] : memref<16x1xf32, #tpu.memory_space<vmem>>, vector<16x1xf32>
    tpu.vector_store %arg6[%c0_12, %c0_13], %45 {strides = array<i32>} : memref<16x1xf32, #tpu.memory_space<vmem>>, vector<16x1xf32>,
    return
  }
  func.func @transform_0(%arg0: i32) -> (i32, i32) {
    %c0_i32 = arith.constant 0 : i32
    %c0_i32_0 = arith.constant 0 : i32
    return %arg0, %c0_i32 : i32, i32
  }
  func.func @transform_1(%arg0: i32) -> (i32, i32) {
    %c0_i32 = arith.constant 0 : i32
    %c0_i32_0 = arith.constant 0 : i32
    %c0_i32_1 = arith.constant 0 : i32
    return %c0_i32, %c0_i32_0 : i32, i32
  }
  func.func @transform_2(%arg0: i32) -> (i32, i32) {
    %c0_i32 = arith.constant 0 : i32
    %c0_i32_0 = arith.constant 0 : i32
    %c0_i32_1 = arith.constant 0 : i32
    return %c0_i32, %c0_i32_0 : i32, i32
  }
  func.func @transform_3(%arg0: i32) -> (i32, i32) {
    %c0_i32 = arith.constant 0 : i32
    %c0_i32_0 = arith.constant 0 : i32
    %c0_i32_1 = arith.constant 0 : i32
    return %c0_i32, %c0_i32_0 : i32, i32
  }
  func.func @transform_4(%arg0: i32) -> (i32, i32) {
    %c0_i32 = arith.constant 0 : i32
    %c0_i32_0 = arith.constant 0 : i32
    %c0_i32_1 = arith.constant 0 : i32
    return %c0_i32, %c0_i32_0 : i32, i32
  }
  func.func @transform_5(%arg0: i32) -> (i32, i32) {
    %c0_i32 = arith.constant 0 : i32
    %c0_i32_0 = arith.constant 0 : i32
    return %arg0, %c0_i32 : i32, i32
  }
}

</mosaic_0001>

<bundles_post_ra>
// kernel: tpu_custom_call.1
= control target key start
LH: loop header
LB: loop body
LE: loop exit
PB: predicated region body
PF: predicated region fallthrough
CT: control target
= control target key end

     0   :  { %11 = vsyncpa [#allocation4], 0  ;;  %s462_s0 = inlined_call_operand.hbm [shape: bf16[16,20], index: 0, kind: input, shape index: {}]   ;;  %s463_s1 = inlined_call_operand.hbm [shape: bf16[20,256], index: 1, kind: input, shape index: {}]   ;;  %s464_s2 = inlined_call_operand.vmem [shape: f32[1,256], index: 2, kind: input, shape index: {}]   ;;  %s465_s3 = inlined_call_operand.vmem [shape: f32[1,32], index: 3, kind: input, shape index: {}]   ;;  %s466_s4 = inlined_call_operand.<no memory space> [shape: f32[1,1], index: 4, kind: input, shape index: {}]   ;;  %s467_s5 = inlined_call_operand.vmem [shape: f32[16,1], index: 5, kind: output, shape index: {}]  }
   0x1   :  { %12 = vsyncpa [#allocation6], 0  ;;  %s373_s18 = smov [#allocation3]   ;;  %s325_s22 = scalar_lea.hbm %s462_s0, 128 }
   0x2   :  { %s18_s19 = sshll.u32 %s373_s18, 4  ;;  %p326_p0 = scmp.ne.s32.totalorder %s462_s0, %s325_s22  ;;  %s19_s19 = int_to_ptr.vmem [resolvable:$true] %s18_s19 }
   0x3   :  { %p329_p1 = scmp.lt.u32.totalorder %s325_s22, %s462_s0 }
   0x5   :  { %p331_p2 = pnand %p329_p1, %p326_p0 }
   0x7   :  { %334 = shalt.err (!%p331_p2)
}
   0x8   :  { %s335_s27 = scalar_lea.vmem %s19_s19, 128  ;;  %p340_p4 = scmp.lt.s32.totalorder %s19_s19, %s19_s19 }
   0x9   :  { %p336_p3 = scmp.ne.s32.totalorder %s19_s19, %s335_s27  ;;  %p341_p5 = scmp.lt.s32.totalorder %s335_s27, %s335_s27 }
   0xb   :  { %p342_p6 = por %p341_p5, %p340_p4 }
   0xd   :  { %p343_p7 = pnand %p342_p6, %p336_p3 }
   0xf   :  { %346 = shalt.err (!%p343_p7)
}
  0x10   :  { %s374_s28 = smov 64   ;;  %s375_s29 = smov 4  }
  0x11   :  { %24 = dma.hbm_to_vmem [thread:$0]  %s462_s0, 128, %s19_s19, [#allocation4], %s374_s28, %s374_s28, %s375_s29  }
  0x12   :  { %s376_s7 = smov [#allocation5]   ;;  %s347_s11 = scalar_lea.hbm %s463_s1, 384 }
  0x13   :  { %s30_s8 = sshll.u32 %s376_s7, 4  ;;  %p348_p8 = scmp.ne.s32.totalorder %s463_s1, %s347_s11  ;;  %s31_s8 = int_to_ptr.vmem [resolvable:$true] %s30_s8 }
  0x14   :  { %p351_p9 = scmp.lt.u32.totalorder %s347_s11, %s463_s1 }
  0x16   :  { %p353_p10 = pnand %p351_p9, %p348_p8 }
  0x18   :  { %356 = shalt.err (!%p353_p10)
}
  0x19   :  { %s357_s16 = scalar_lea.vmem %s31_s8, 384  ;;  %p362_p12 = scmp.lt.s32.totalorder %s31_s8, %s31_s8 }
  0x1a   :  { %p358_p11 = scmp.ne.s32.totalorder %s31_s8, %s357_s16  ;;  %p363_p13 = scmp.lt.s32.totalorder %s357_s16, %s357_s16 }
  0x1c   :  { %p364_p0 = por %p363_p13, %p362_p12 }
  0x1e   :  { %p365_p1 = pnand %p364_p0, %p358_p11 }
  0x20   :  { %368 = shalt.err (!%p365_p1)
}
  0x21   :  { %s377_s0 = smov 128   ;;  %s378_s17 = smov 8  }
  0x22   :  { %36 = dma.hbm_to_vmem [thread:$0]  %s463_s1, 384, %s31_s8, [#allocation6], %s377_s0, %s377_s0, %s378_s17  }
  0x23   :  { %369 = dma.done.wait [#allocation4], 128  }
  0x24   :  { %370 = vsyncadd [#allocation4], 4294967168 }
  0x25   :  { %371 = dma.done.wait [#allocation6], 384  }
  0x26   :  { %372 = vsyncadd [#allocation6], 4294966912  ;;  %v379_v0 = vmov 0   ;;  %v380_v1 = vmov 19   ;;  %v381_v2 = vmov 17   ;;  %vm93_vm0 = vcmask 1041408  }
  0x27   :  { %132 = vmatprep.mubr.bf16.mxu0 %v379_v0  ;;  %305 = vset.pattern.permute.xlu1 %v380_v1  ;;  %v318_v3 = vld [vmem:[#allocation5 + $0x4] ss:$8 sps:$4 sm:$0xff]   ;;  %v320_v4 = vld [vmem:[#allocation5] ss:$8 sps:$4 sm:$0xff]   ;;  %v56_v5 = vld [vmem:[#allocation5 + $0x10] sm:$0x33]  ;;  %v59_v17 = vlaneseq }
  0x28   :  { %293 = vset.pattern.permute.xlu0 %v381_v2  ;;  %v50_v6 = vld [vmem:[#allocation3] sm:$0xff]   ;;  %100 = vmatprep.subr.bf16.mxu0 %v318_v3  ;;  %v276_v7 = vcombine.high %v56_v5, %v56_v5  ;;  %v275_v8 = vcombine.low %v56_v5, %v56_v5  ;;  %vm89_vm1 = vcmask 162816   ;;  %v382_v14 = vmov 16  }
  0x29   :  { %v52_v9 = vunpack.c.l.bf16 %v50_v6  ;;  %101 = vmatpush1.bf16.msra.mxu0 %v320_v4  ;;  %v53_v10 = vunpack.c.h.bf16 %v50_v6  ;;  %v279_v13 = vld [vmem:[%s465_s3] ss:$0 sm:$0xff]  ;;  %v383_v15 = vmov 18   ;;  %v60_v18 = vshrl.u32 %v59_v17, 7  ;;  %s385_s3 = smov 32  }
  0x2a   :  { %277 = vmatprep.subr.msk.bf16.mxu0 %vm93_vm0, %v276_v7  ;;  %v95_v11 = vsel %vm93_vm0, %v275_v8, 0  ;;  %v57_v22 = vld [vmem:[%s464_s2] sm:$0x3]  ;;  %s384_s2 = smov 96   ;;  %vm252_vm2 = vcmask 261120   ;;  %vm263_vm3 = vcmask 7168  }
  0x2b   :  { %v306_v12 = vpack.i.bf16 %v53_v10, %v52_v9  ;;  %v61_v20 = vsub.s32 0, %v60_v18  ;;  %v65_v23 = vsub.s32 1, %v60_v18  ;;  %v260_v18 = vstv %s466_s4 }
  0x2d   :  { %103 = vmatpush1.bf16.msra.mxu0 %v95_v11  ;;  %307 = vperm.xlu1 %305, %v306_v12   ;;  %v62_v25 = vrot.slane %v57_v22, %v61_v20  ;;  %v66_v26 = vrot.slane %v57_v22, %v65_v23 }
  0x2e   :  { %295 = vperm.xlu0 %293, %v306_v12  }
  0x30   :  { %278 = vmatmul.mubr.msk.bf16.vlgmr.msra.gmra.mrb[0].mxu0 %vm89_vm1, %v50_v6 }
  0x31   :  { %237 = vrot.lane.b32.xlu1 %v279_v13, %s374_s28 }
  0x32   :  { %311 = vset.pattern.permute.xlu1 %v382_v14  ;;  %299 = vset.pattern.permute.xlu0 %v383_v15 }
  0x33   :  { %301 = vperm.xlu0 %299, %v306_v12  }
  0x35   :  { %313 = vperm.xlu1 %311, %v306_v12  }
  0x37   :  { %317 = vset.pattern.permute.xlu0 %v380_v1 }
  0xac   :  { %v308_v16 = vpop.permute.xlu1 %307 }
  0xad   :  { %v296_v21 = vpop.permute.xlu0 %295  ;;  %v309_v47 = vunpack.i.l.bf16 %v308_v16  ;;  %v310_v50 = vunpack.i.h.bf16 %v308_v16 }
  0xae   :  { %v297_v27 = vunpack.i.l.bf16 %v296_v21  ;;  %v298_v31 = vunpack.i.h.bf16 %v296_v21 }
  0xb0   :  { %v238_v19 = vpop.permute.xlu1 %237 }
  0xb2   :  { %v302_v30 = vpop.permute.xlu0 %301 }
  0xb3   :  { %v303_v38 = vunpack.i.l.bf16 %v302_v30  ;;  %v304_v43 = vunpack.i.h.bf16 %v302_v30 }
  0xb4   :  { %v314_v24 = vpop.permute.xlu1 %313 }
  0xb5   :  { %v315_v28 = vunpack.i.l.bf16 %v314_v24  ;;  %v316_v34 = vunpack.i.h.bf16 %v314_v24 }
 0x103   :  { %v134_v29 = vpop.f32.mrb[0].mxu0 }
 0x104   :  { %v135_v32 = vadd.f32 %v134_v29, %v62_v25  ;;  %v136_v33 = vpop.f32.mrb[1].mxu0 }
 0x105   :  { %v137_v35 = vadd.f32 %v136_v33, %v66_v26  ;;  %v138_v36 = vpop.f32.mrb[2].mxu0 }
 0x106   :  { %v155_v37 = vmul.f32 %v315_v28, %v135_v32  ;;  %v139_v39 = vadd.f32 %v138_v36, %v62_v25  ;;  %v140_v40 = vpop.f32.mrb[3].mxu0  ;;  %v167_v41 = vmul.f32 %v297_v27, %v135_v32  ;;  %v187_v48 = vmul.f32 %v303_v38, %v135_v32 }
 0x107   :  { %v141_v42 = vadd.f32 %v140_v40, %v66_v26  ;;  %v207_v52 = vmul.f32 %v309_v47, %v135_v32  ;;  %v143_v54 = vmax.f32 %v137_v35, 0.0 }
 0x108   :  { %171 = vrot.lane.b32.xlu0 %v167_v41, %s384_s2  ;;  %v168_v44 = vmul.f32 %v298_v31, %v139_v39  ;;  %v157_v45 = vadd.f32 %v155_v37, %v137_v35  ;;  %v156_v46 = vmul.f32 %v316_v34, %v139_v39  ;;  %v188_v51 = vmul.f32 %v304_v43, %v139_v39 }
 0x109   :  { %v208_v53 = vmul.f32 %v310_v50, %v139_v39  ;;  %v144_v55 = vmax.f32 %v141_v42, 0.0  ;;  %v240_v56 = vmul.f32 %v238_v19, %v143_v54 }
 0x10a   :  { %173 = vrot.lane.b32.xlu1 %v168_v44, %s384_s2  ;;  %v158_v49 = vadd.f32 %v156_v46, %v141_v42 }
 0x10b   :  { %v241_v57 = vmul.f32 %v238_v19, %v144_v55 }
 0x10c   :  { %191 = vrot.lane.b32.xlu0 %v187_v48, %s374_s28 }
 0x10e   :  { %193 = vrot.lane.b32.xlu1 %v188_v51, %s374_s28 }
 0x110   :  { %211 = vrot.lane.b32.xlu0 %v207_v52, %s385_s3 }
 0x112   :  { %213 = vrot.lane.b32.xlu1 %v208_v53, %s385_s3 }
 0x114   :  { %223 = vrot.lane.b32.xlu0 %v137_v35, %s384_s2 }
 0x116   :  { %225 = vrot.lane.b32.xlu1 %v141_v42, %s384_s2 }
 0x118   :  { %244 = vrot.lane.b32.xlu0 %v240_v56, %s374_s28 }
 0x11a   :  { %246 = vrot.lane.b32.xlu1 %v241_v57, %s374_s28 }
 0x17a   :  { %v172_v58 = vpop.permute.xlu0 %171 }
 0x17b   :  { %v177_v61 = vadd.f32 %v172_v58, %v157_v45 }
 0x17c   :  { %v174_v59 = vpop.permute.xlu1 %173 }
 0x17d   :  { %v178_v63 = vadd.f32 %v174_v59, %v158_v49 }
 0x17e   :  { %v192_v60 = vpop.permute.xlu0 %191 }
 0x17f   :  { %v197_v0 = vadd.f32 %v192_v60, %v177_v61 }
 0x180   :  { %v194_v62 = vpop.permute.xlu1 %193 }
 0x181   :  { %v198_v2 = vadd.f32 %v194_v62, %v178_v63 }
 0x182   :  { %v212_v1 = vpop.permute.xlu0 %211 }
 0x183   :  { %v217_v3 = vadd.f32 %v212_v1, %v197_v0 }
 0x184   :  { %v214_v4 = vpop.permute.xlu1 %213 }
 0x185   :  { %v219_v5 = vmax.f32 %v217_v3, 0.0  ;;  %v218_v6 = vadd.f32 %v214_v4, %v198_v2 }
 0x186   :  { %v224_v7 = vpop.permute.xlu0 %223 }
 0x187   :  { %v220_v8 = vmax.f32 %v218_v6, 0.0  ;;  %v229_v10 = vmul.f32 %v224_v7, %v219_v5 }
 0x188   :  { %v226_v9 = vpop.permute.xlu1 %225 }
 0x189   :  { %v230_v12 = vmul.f32 %v226_v9, %v220_v8 }
 0x18a   :  { %v245_v11 = vpop.permute.xlu0 %244 }
 0x18b   :  { %v250_v13 = vadd.f32 %v245_v11, %v229_v10 }
 0x18c   :  { %v247_v14 = vpop.permute.xlu1 %246 }
 0x18d   :  { %v251_v15 = vadd.f32 %v247_v14, %v230_v12  ;;  %v253_v16 = vsel %vm252_vm2, %v250_v13, 0.0 }
 0x18e   :  { %254 = vadd.xlane.f32.xlu0 %v253_v16 }
 0x18f   :  { %v256_v17 = vsel %vm252_vm2, %v251_v15, 0.0 }
 0x190   :  { %257 = vadd.xlane.f32.xlu1 %v256_v17 }
 0x21b   :  { %v255_v19 = vpop.xlane.xlu0 %254 }
 0x21c   :  { %v261_v20 = vadd.f32 %v260_v18, %v255_v19 }
 0x21d   :  { %v258_v21 = vpop.xlane.xlu1 %257 }
 0x21e   :  { %264 = vst.msk [vmem:[%s467_s5] sm:$0xff] %vm263_vm3, %v261_v20  ;;  %v262_v22 = vadd.f32 %v260_v18, %v258_v21 }
 0x220   :  { %265 = vst.msk [vmem:[%s467_s5 + $0x8] sm:$0xff] %vm263_vm3, %v262_v22 }
 0x221   :  { %270 = vsyncpa [#allocation4], 1 }
 0x222   :  { %271 = vsyncpa [#allocation6], 1 }

</bundles_post_ra>
